<compile_context>
chip_gen: v6e
topology: v6e:2x2x1
jax: 0.10.0
libtpu: 0.0.40
codegen_flags: <defaults>
</compile_context>

<pallas_src>
import jax
import jax.numpy as jnp
from jax import lax
from jax.experimental import pallas as pl
from jax.experimental.pallas import tpu as pltpu


def _round_up(n, m):
    return ((n + m - 1) // m) * m


def _dqn_kernel(x_ref, w1T_ref, b1_ref, w2T_ref, b2_ref, yT_ref):
    # Layer 1 on the MXU, transpose folded into the contraction:
    #   (H, D) . (tb, D)^T  ->  (H, tb), f32 accumulation.
    h = lax.dot_general(
        w1T_ref[...], x_ref[...],
        dimension_numbers=(((1,), (1,)), ((), ())),
        preferred_element_type=jnp.float32,
    )
    # Bias + ReLU on the VPU; b1 (H, 1) broadcasts over the lane/batch axis.
    h = jnp.maximum(h + b1_ref[...], 0.0)
    # Layer 2 (H -> 1) on the MXU: (1, H) @ (H, tb) -> (1, tb).
    # b2 is a free SMEM scalar.
    y = jnp.dot(w2T_ref[...], h, preferred_element_type=jnp.float32) + b2_ref[0, 0]
    yT_ref[...] = y.astype(yT_ref.dtype)


def dqn_forward(x, w1, b1, w2, b2, *, tile_b=8192):
    """DQN forward: relu(x @ w1 + b1) @ w2 + b2.

    x: (B, D); w1: (D, H); b1: (1, H); w2: (H, 1); b2: (1, 1)  ->  (B, 1)
    """
    B, D = x.shape
    H = w1.shape[1]
    assert tile_b % 128 == 0, "tile_b must be a multiple of 128 (lane width)"

    # Batch tile on lanes. Keep >= 2 grid steps when the batch allows it so
    # the "parallel" grid axis has something to shard across v7x's two TCs.
    B128 = _round_up(B, 128)
    if B128 > 128:
        tb = min(tile_b, _round_up((B128 + 1) // 2, 128))
    else:
        tb = 128
    Bp = _round_up(B, tb)

    # Only a (cheap) zero-pad when B doesn't divide the tile; no transpose,
    # no dtype cast -> no extra full HBM pass over x.
    x_pad = jnp.pad(x, ((0, Bp - B), (0, 0))) if Bp != B else x

    w1T = jnp.asarray(w1, jnp.float32).T                    # (H, D)  resident
    b1c = jnp.asarray(b1, jnp.float32).reshape(H, 1)        # (H, 1)  resident
    w2T = jnp.asarray(w2, jnp.float32).reshape(1, H)        # (1, H)  resident
    b2c = jnp.asarray(b2, jnp.float32).reshape(1, 1)        # (1, 1)  SMEM scalar

    cost = pl.CostEstimate(
        flops=2 * Bp * (D * H + H),
        transcendentals=0,
        bytes_accessed=(Bp * D * 4        # x stream (f32, natural layout)
                        + H * D * 4       # w1
                        + 2 * H * 4 + 4   # b1, w2, b2
                        + Bp * 4),        # output
    )

    yT = pl.pallas_call(
        _dqn_kernel,
        out_shape=jax.ShapeDtypeStruct((1, Bp), jnp.float32),
        grid=(Bp // tb,),
        in_specs=[
            pl.BlockSpec((tb, D), lambda i: (i, 0)),             # x batch tile
            pl.BlockSpec((H, D), lambda i: (0, 0)),              # w1^T resident
            pl.BlockSpec((H, 1), lambda i: (0, 0)),              # b1 resident
            pl.BlockSpec((1, H), lambda i: (0, 0)),              # w2^T resident
            pl.BlockSpec(memory_space=pltpu.MemorySpace.SMEM),   # b2 scalar
        ],
        out_specs=pl.BlockSpec((1, tb), lambda i: (0, i)),       # lane-dense out
        compiler_params=pltpu.CompilerParams(
            dimension_semantics=("parallel",),        # megacore sharding on v7x
            vmem_limit_bytes=32 * 1024 * 1024,        # big tiles also fit v5e
        ),
        cost_estimate=cost,
    )(x_pad, w1T, b1c, w2T, b2c)

    # Torch-parity (B, 1) output. Latency-critical consumers can use the
    # (1, Bp) row directly and skip this tiny slice+transpose op.
    return yT[:, :B].T


def init_dqn_params(key, input_dim, hidden_units):
    """Deterministic init mimicking nn.Linear's U(-1/sqrt(fan_in), 1/sqrt(fan_in))."""
    k1, k2, k3, k4 = jax.random.split(key, 4)
    bound1 = 1.0 / (input_dim ** 0.5)
    bound2 = 1.0 / (hidden_units ** 0.5)
    w1 = jax.random.uniform(k1, (input_dim, hidden_units), jnp.float32,
                            minval=-bound1, maxval=bound1)
    b1 = jax.random.uniform(k2, (1, hidden_units), jnp.float32,
                            minval=-bound1, maxval=bound1)
    w2 = jax.random.uniform(k3, (hidden_units, 1), jnp.float32,
                            minval=-bound2, maxval=bound2)
    b2 = jax.random.uniform(k4, (1, 1), jnp.float32,
                            minval=-bound2, maxval=bound2)
    return w1, b1, w2, b2


if __name__ == "__main__":
    B, INPUT_DIM, HIDDEN = 8, 16, 32

    key = jax.random.PRNGKey(0)
    kx, kp = jax.random.split(key)
    x = jax.random.normal(kx, (B, INPUT_DIM), jnp.float32)
    w1, b1, w2, b2 = init_dqn_params(kp, INPUT_DIM, HIDDEN)

    y = dqn_forward(x, w1, b1, w2, b2)
    jax.block_until_ready(y)

    # Pure-JAX f32 reference (kernel is all-f32, so numerics should match to
    # MXU accumulation tolerance).
    ref = jnp.maximum(x @ w1 + b1, 0.0) @ w2 + b2

    assert y.shape == (B, 1)
    assert jnp.allclose(y, ref, atol=1e-4, rtol=1e-4)

    print("KERNEL_OK")
</pallas_src>

<mosaic_0001>
module attributes {stable_mosaic.version = 11 : i64} {
  func.func @_dqn_kernel(%arg0: i32, %arg1: memref<128x16xf32, #tpu.memory_space<vmem>>, %arg2: memref<32x16xf32, #tpu.memory_space<vmem>>, %arg3: memref<32x1xf32, #tpu.memory_space<vmem>>, %arg4: memref<1x32xf32, #tpu.memory_space<vmem>>, %arg5: memref<1x1xf32, #tpu.memory_space<smem>>, %arg6: memref<1x128xf32, #tpu.memory_space<vmem>>) attributes {dimension_semantics = [#tpu.dimension_semantics<parallel>], iteration_bounds = array<i64: 1>, scalar_prefetch = 0 : i64, scratch_operands = 0 : i64, tpu.core_type = #tpu.core_type<tc>, window_params = [{transform_indices = @transform_0, window_bounds = array<i64: 128, 16>}, {pipeline_mode = #tpu.pipeline_mode<synchronous>, transform_indices = @transform_1, window_bounds = array<i64: 32, 16>}, {pipeline_mode = #tpu.pipeline_mode<synchronous>, transform_indices = @transform_2, window_bounds = array<i64: 32, 1>}, {pipeline_mode = #tpu.pipeline_mode<synchronous>, transform_indices = @transform_3, window_bounds = array<i64: 1, 32>}, {transform_indices = @transform_4, window_bounds = array<i64: 1, 1>}, {transform_indices = @transform_5, window_bounds = array<i64: 1, 128>}]} {
    %c0 = arith.constant 0 : index
    %c0_0 = arith.constant 0 : index
    %0 = vector.load %arg2[%c0, %c0_0] : memref<32x16xf32, #tpu.memory_space<vmem>>, vector<32x16xf32>
    %c0_1 = arith.constant 0 : index
    %c0_2 = arith.constant 0 : index
    %1 = vector.load %arg1[%c0_1, %c0_2] : memref<128x16xf32, #tpu.memory_space<vmem>>, vector<128x16xf32>
    %cst = arith.constant dense<0.000000e+00> : vector<32x128xf32>
    %2 = tpu.matmul %0, %1, %cst {dimension_numbers = #tpu.dot_dimension_numbers<[1], [1], [0], [0], [0, 0, 1, 0], [], []>} : vector<32x16xf32>, vector<128x16xf32>, vector<32x128xf32> -> vector<32x128xf32>
    %c0_3 = arith.constant 0 : index
    %c0_4 = arith.constant 0 : index
    %3 = vector.load %arg3[%c0_3, %c0_4] : memref<32x1xf32, #tpu.memory_space<vmem>>, vector<32x1xf32>
    %4 = vector.broadcast %3 : vector<32x1xf32> to vector<32x128xf32>
    %5 = arith.addf %2, %4 : vector<32x128xf32>
    %cst_5 = arith.constant 0.000000e+00 : f32
    %6 = vector.broadcast %cst_5 : f32 to vector<32x128xf32>
    %7 = arith.maximumf %5, %6 : vector<32x128xf32>
    %c0_6 = arith.constant 0 : index
    %c0_7 = arith.constant 0 : index
    %8 = vector.load %arg4[%c0_6, %c0_7] : memref<1x32xf32, #tpu.memory_space<vmem>>, vector<1x32xf32>
    %cst_8 = arith.constant dense<0.000000e+00> : vector<1x128xf32>
    %9 = tpu.matmul %8, %7, %cst_8 {dimension_numbers = #tpu.dot_dimension_numbers<[1], [0], [0], [1], [0, 0, 1, 1], [], []>} : vector<1x32xf32>, vector<32x128xf32>, vector<1x128xf32> -> vector<1x128xf32>
    %c0_9 = arith.constant 0 : index
    %c0_10 = arith.constant 0 : index
    %10 = memref.load %arg5[%c0_9, %c0_10] : memref<1x1xf32, #tpu.memory_space<smem>>
    %11 = vector.broadcast %10 : f32 to vector<1x128xf32>
    %12 = arith.addf %9, %11 : vector<1x128xf32>
    %c0_11 = arith.constant 0 : index
    %c0_12 = arith.constant 0 : index
    %13 = vector.load %arg6[%c0_11, %c0_12] : memref<1x128xf32, #tpu.memory_space<vmem>>, vector<1x128xf32>
    tpu.vector_store %arg6[%c0_11, %c0_12], %12 {strides = array<i32>} : memref<1x128xf32, #tpu.memory_space<vmem>>, vector<1x128xf32>,
    return
  }
  func.func @transform_0(%arg0: i32) -> (i32, i32) {
    %c0_i32 = arith.constant 0 : i32
    %c0_i32_0 = arith.constant 0 : i32
    return %arg0, %c0_i32 : i32, i32
  }
  func.func @transform_1(%arg0: i32) -> (i32, i32) {
    %c0_i32 = arith.constant 0 : i32
    %c0_i32_0 = arith.constant 0 : i32
    %c0_i32_1 = arith.constant 0 : i32
    return %c0_i32, %c0_i32_0 : i32, i32
  }
  func.func @transform_2(%arg0: i32) -> (i32, i32) {
    %c0_i32 = arith.constant 0 : i32
    %c0_i32_0 = arith.constant 0 : i32
    %c0_i32_1 = arith.constant 0 : i32
    return %c0_i32, %c0_i32_0 : i32, i32
  }
  func.func @transform_3(%arg0: i32) -> (i32, i32) {
    %c0_i32 = arith.constant 0 : i32
    %c0_i32_0 = arith.constant 0 : i32
    %c0_i32_1 = arith.constant 0 : i32
    return %c0_i32, %c0_i32_0 : i32, i32
  }
  func.func @transform_4(%arg0: i32) -> (i32, i32) {
    %c0_i32 = arith.constant 0 : i32
    %c0_i32_0 = arith.constant 0 : i32
    %c0_i32_1 = arith.constant 0 : i32
    return %c0_i32, %c0_i32_0 : i32, i32
  }
  func.func @transform_5(%arg0: i32) -> (i32, i32) {
    %c0_i32 = arith.constant 0 : i32
    %c0_i32_0 = arith.constant 0 : i32
    return %c0_i32, %arg0 : i32, i32
  }
}

</mosaic_0001>

<bundles_post_ra>
// kernel: tpu_custom_call.1
= control target key start
LH: loop header
LB: loop body
LE: loop exit
PB: predicated region body
PF: predicated region fallthrough
CT: control target
= control target key end

     0   :  { %vm66_vm0 = vcmask 130048   ;;  %v431_v2 = vmov 0   ;;  %s582_s0 = inlined_call_operand.vmem [shape: f32[128,16], index: 0, kind: input, shape index: {}]   ;;  %s583_s1 = inlined_call_operand.vmem [shape: f32[32,16], index: 1, kind: input, shape index: {}]   ;;  %s584_s2 = inlined_call_operand.vmem [shape: f32[32,1], index: 2, kind: input, shape index: {}]   ;;  %s585_s3 = inlined_call_operand.vmem [shape: f32[1,32], index: 3, kind: input, shape index: {}]   ;;  %s586_s4 = inlined_call_operand.<no memory space> [shape: f32[1,1], index: 4, kind: input, shape index: {}]   ;;  %s587_s5 = inlined_call_operand.hbm [shape: f32[1,128], index: 5, kind: output, shape index: {}]  }
   0x1   :  { %v41_v0 = vld [vmem:[%s582_s0 + $0x78] sm:$0xff]  ;;  %v40_v1 = vld [vmem:[%s582_s0 + $0x70] sm:$0xff]  ;;  %408 = vset.pattern.permute.xlu1 %v431_v2  ;;  %407 = vset.pattern.permute.xlu0 %v431_v2  ;;  %v39_v3 = vld [vmem:[%s582_s0 + $0x68] sm:$0xff] }
   0x2   :  { %354 = vmatprep.subr.msk.mxu0 %vm66_vm0, %v41_v0  ;;  %v22_v4 = vld [vmem:[%s583_s1] sm:$0xff]  ;;  %v45_v5 = vld [vmem:[%s584_s2 + $0x18] sm:$0xff]  ;;  %v43_v6 = vld [vmem:[%s584_s2 + $0x8] sm:$0xff] }
   0x3   :  { %355 = vmatpush3.xpose.msk.msra.mxu0 %vm66_vm0, %v41_v0  ;;  %386 = vmatprep.mubr.msk.f32.mxu0 %vm66_vm0, %v22_v4  ;;  %v38_v7 = vld [vmem:[%s582_s0 + $0x60] sm:$0xff]  ;;  %v44_v8 = vld [vmem:[%s584_s2 + $0x10] sm:$0xff] }
   0x4   :  { %356 = vmatprep.subr.msk.mxu0 %vm66_vm0, %v40_v1  ;;  %63 = vperm.xlu0 %407, %v45_v5  }
   0x5   :  { %53 = vperm.xlu1 %408, %v43_v6  }
   0x7   :  { %357 = vmatpush3.xpose.msk.msra.mxu0 %vm66_vm0, %v40_v1 }
   0x8   :  { %358 = vmatprep.subr.msk.mxu0 %vm66_vm0, %v39_v3 }
   0x9   :  { %11 = vsyncpa [#allocation4], 0  ;;  %v42_v9 = vld [vmem:[%s584_s2] sm:$0xff]  ;;  %58 = vperm.xlu0 %407, %v44_v8   ;;  %v37_v10 = vld [vmem:[%s582_s0 + $0x58] sm:$0xff]  ;;  %v432_v25 = vmov 0.0   ;;  %vm433_vm1 = vmmov 0   ;;  %v218_v43 = vstv %s586_s4 }
   0xa   :  { %48 = vperm.xlu1 %408, %v42_v9   ;;  %v36_v11 = vld [vmem:[%s582_s0 + $0x50] sm:$0xff]  ;;  %v35_v12 = vld [vmem:[%s582_s0 + $0x48] sm:$0xff]  ;;  %v34_v13 = vld [vmem:[%s582_s0 + $0x40] sm:$0xff]  ;;  %392 = vmatprep.subr.mxu1 %v432_v25  ;;  %vm219_vm2 = vcmask 261120   ;;  %s434_s16 = smov [#allocation3]  }
   0xb   :  { %359 = vmatpush3.xpose.msk.msra.mxu0 %vm66_vm0, %v39_v3  ;;  %v33_v14 = vld [vmem:[%s582_s0 + $0x38] sm:$0xff]  ;;  %v32_v15 = vld [vmem:[%s582_s0 + $0x30] sm:$0xff]  ;;  %v31_v16 = vld [vmem:[%s582_s0 + $0x28] sm:$0xff]  ;;  %400 = vmatprep.mubr.msk.f32.mxu1 %vm433_vm1, %v432_v25  ;;  %s300_s17 = sshll.u32 %s434_s16, 4  ;;  %s301_s17 = int_to_ptr.vmem [resolvable:$true] %s300_s17 }
   0xc   :  { %360 = vmatprep.subr.msk.mxu0 %vm66_vm0, %v38_v7  ;;  %v30_v17 = vld [vmem:[%s582_s0 + $0x20] sm:$0xff]  ;;  %v29_v18 = vld [vmem:[%s582_s0 + $0x18] sm:$0xff]  ;;  %v28_v19 = vld [vmem:[%s582_s0 + $0x10] sm:$0xff]  ;;  %s409_s18 = scalar_lea.vmem %s301_s17, 16  ;;  %s413_s19 = scalar_lea.vmem %s301_s17, 32 }
   0xd   :  { %v27_v20 = vld [vmem:[%s582_s0 + $0x8] sm:$0xff]  ;;  %v26_v21 = vld [vmem:[%s582_s0] sm:$0xff]  ;;  %v24_v23 = vld [vmem:[%s583_s1 + $0x10] sm:$0xff]  ;;  %p410_p0 = scmp.ne.s32.totalorder %s301_s17, %s409_s18  ;;  %p414_p1 = scmp.lt.s32.totalorder %s301_s17, %s301_s17 }
   0xe   :  { %v23_v22 = vld [vmem:[%s583_s1 + $0x8] sm:$0xff]  ;;  %v25_v24 = vld [vmem:[%s583_s1 + $0x18] sm:$0xff]  ;;  %v216_v42 = vld [vmem:[%s585_s3] sm:$0x1]  ;;  %p415_p2 = scmp.lt.s32.totalorder %s413_s19, %s409_s18 }
   0xf   :  { %361 = vmatpush3.xpose.msk.msra.mxu0 %vm66_vm0, %v38_v7 }
  0x10   :  { %362 = vmatprep.subr.msk.mxu0 %vm66_vm0, %v37_v10  ;;  %p416_p3 = por %p415_p2, %p414_p1 }
  0x12   :  { %p417_p4 = pnand %p416_p3, %p410_p0 }
  0x13   :  { %363 = vmatpush3.xpose.msk.msra.mxu0 %vm66_vm0, %v37_v10 }
  0x14   :  { %364 = vmatprep.subr.msk.mxu0 %vm66_vm0, %v36_v11 }
  0x17   :  { %365 = vmatpush3.xpose.msk.msra.mxu0 %vm66_vm0, %v36_v11 }
  0x18   :  { %366 = vmatprep.subr.msk.mxu0 %vm66_vm0, %v35_v12 }
  0x1b   :  { %367 = vmatpush3.xpose.msk.msra.mxu0 %vm66_vm0, %v35_v12 }
  0x1c   :  { %368 = vmatprep.subr.msk.mxu0 %vm66_vm0, %v34_v13 }
  0x1f   :  { %369 = vmatpush3.xpose.msk.msra.mxu0 %vm66_vm0, %v34_v13 }
  0x20   :  { %370 = vmatprep.subr.msk.mxu0 %vm66_vm0, %v33_v14 }
  0x23   :  { %371 = vmatpush3.xpose.msk.msra.mxu0 %vm66_vm0, %v33_v14 }
  0x24   :  { %372 = vmatprep.subr.msk.mxu0 %vm66_vm0, %v32_v15 }
  0x27   :  { %373 = vmatpush3.xpose.msk.msra.mxu0 %vm66_vm0, %v32_v15 }
  0x28   :  { %374 = vmatprep.subr.msk.mxu0 %vm66_vm0, %v31_v16 }
  0x2b   :  { %375 = vmatpush3.xpose.msk.msra.mxu0 %vm66_vm0, %v31_v16 }
  0x2c   :  { %376 = vmatprep.subr.msk.mxu0 %vm66_vm0, %v30_v17 }
  0x2f   :  { %377 = vmatpush3.xpose.msk.msra.mxu0 %vm66_vm0, %v30_v17 }
  0x30   :  { %378 = vmatprep.subr.msk.mxu0 %vm66_vm0, %v29_v18 }
  0x33   :  { %379 = vmatpush3.xpose.msk.msra.mxu0 %vm66_vm0, %v29_v18 }
  0x34   :  { %380 = vmatprep.subr.msk.mxu0 %vm66_vm0, %v28_v19 }
  0x37   :  { %381 = vmatpush3.xpose.msk.msra.mxu0 %vm66_vm0, %v28_v19 }
  0x38   :  { %382 = vmatprep.subr.msk.mxu0 %vm66_vm0, %v27_v20 }
  0x3b   :  { %383 = vmatpush3.xpose.msk.msra.mxu0 %vm66_vm0, %v27_v20 }
  0x3c   :  { %384 = vmatprep.subr.msk.mxu0 %vm66_vm0, %v26_v21 }
  0x3f   :  { %385 = vmatpush3.xpose.msk.msra.mxu0 %vm66_vm0, %v26_v21 }
  0x42   :  { %387 = vmatmul.mubr.msk.f32.vlgmr.msra.gmra.mxu0 %vm66_vm0, %v23_v22 }
  0x43   :  { %389 = vmatprep.mubr.msk.f32.mxu0 %vm66_vm0, %v24_v23 }
  0x46   :  { %390 = vmatmul.mubr.msk.f32.gmra.mxu0 %vm66_vm0, %v25_v24 }
  0x7f   :  { %v64_v26 = vpop.permute.xlu0 %63 }
  0x80   :  { %v54_v27 = vpop.permute.xlu1 %53 }
  0x84   :  { %v59_v31 = vpop.permute.xlu0 %58 }
  0x85   :  { %v49_v33 = vpop.permute.xlu1 %48 }
 0x102   :  { %v388_v28 = vpop.f32.mrf.mxu0 }
 0x103   :  { %v199_v35 = vadd.f32 %v388_v28, %v54_v27 }
 0x104   :  { %v193_v29 = vpop.f32.mrf.mxu0 }
 0x105   :  { %v194_v38 = vadd.f32 %v193_v29, %v49_v33  ;;  %v213_v40 = vmax.f32 %v199_v35, 0.0 }
 0x106   :  { %v391_v30 = vpop.f32.mrf.mxu0 }
 0x107   :  { %v209_v32 = vadd.f32 %v391_v30, %v64_v26  ;;  %v212_v41 = vmax.f32 %v194_v38, 0.0 }
 0x108   :  { %v203_v34 = vpop.f32.mrf.mxu0 }
 0x109   :  { %v215_v36 = vmax.f32 %v209_v32, 0.0  ;;  %v204_v37 = vadd.f32 %v203_v34, %v59_v31 }
 0x10b   :  { %v214_v39 = vmax.f32 %v204_v37, 0.0  ;;  %393 = vmatpush3.msra.mxu1 %v215_v36 }
 0x10c   :  { %394 = vmatprep.subr.mxu1 %v432_v25 }
 0x10d   :  { %395 = vmatpush3.msra.mxu1 %v214_v39 }
 0x10e   :  { %396 = vmatprep.subr.mxu1 %v432_v25 }
 0x10f   :  { %397 = vmatpush3.msra.mxu1 %v213_v40 }
 0x110   :  { %398 = vmatprep.subr.mxu1 %v432_v25 }
 0x111   :  { %399 = vmatpush3.msra.mxu1 %v212_v41 }
 0x112   :  { %401 = vmatmul.mubr.msk.f32.vlgmr.msra.gmra.mxu1 %vm219_vm2, %v216_v42 }
 0x1d2   :  { %v289_v44 = vpop.f32.mrf.mxu1 }
 0x1d3   :  { %v290_v45 = vadd.f32 %v289_v44, %v218_v43 }
 0x1d4   :  { %v402_v46 = vpop.f32.mrf.mxu1 }
 0x1d5   :  { %293 = vst [vmem:[#allocation3] sm:$0x1] %v290_v45 }
 0x1d6   :  { %420 = shalt.err (!%p417_p4)
}
 0x1d7   :  { %303 = dma.vmem_to_hbm [thread:$0]  %s301_s17, 16, %s587_s5, [#allocation4]  }
 0x1d8   :  { %429 = dma.done.wait [#allocation4], 16  }
 0x1d9   :  { %430 = vsyncadd [#allocation4], 4294967280 }
 0x1da   :  { %307 = vsyncpa [#allocation4], 1 }

</bundles_post_ra>
